<compile_context>
chip_gen: v7x
topology: tpu7x:2x2x1
jax: 0.10.0
libtpu: 0.0.40
codegen_flags: <defaults>
</compile_context>

<pallas_src>
import functools
import math

import jax
import jax.numpy as jnp
from jax import lax
from jax.experimental import pallas as pl
from jax.experimental.pallas import tpu as pltpu

LEAKY_RELU_SLOPE = 0.3   # repo constant LEAKY_RELU_SLOPE
LN_EPS = 1e-5            # torch LayerNorm / GroupNorm default eps
NEG_INF = -1e9


# ----------------------------- helpers traced inside kernels -----------------------------
def _layer_norm(x, g, b):
    mu = jnp.mean(x, axis=-1, keepdims=True)
    var = jnp.mean(jnp.square(x - mu), axis=-1, keepdims=True)
    return (x - mu) * lax.rsqrt(var + LN_EPS) * g + b


def _leaky_relu(x):
    return jnp.where(x >= 0, x, LEAKY_RELU_SLOPE * x)


# ----------------------------- chip-aware budgets -----------------------------
@functools.lru_cache(maxsize=1)
def _vmem_budget_bytes():
    try:
        cap = int(pltpu.get_tpu_info().vmem_capacity_bytes)
    except Exception:
        cap = 64 * 1024 * 1024
    # leave DMA double-buffering headroom; 48 MiB on v7x (64 MiB VMEM), 96 MiB on v5e/v6e (128 MiB)
    return min(cap * 3 // 4, 100 * 1024 * 1024)


def _pick_q_tile(T, H):
    """Largest query tile whose ~6 live (H, Tq, T) f32 score slabs fit in half the VMEM budget."""
    budget = _vmem_budget_bytes()
    per_row = 6 * H * T * 4
    cap = (budget // 2) // max(per_row, 1)
    cap = int(min(256, max(8, cap)))
    cap -= cap % 8
    if T <= cap:
        return T
    for tq in range(cap, 7, -8):
        if T % tq == 0:
            return tq
    return T   # TODO(synk): pad ragged very-long sequences to a multiple of 8 instead


# ----------------------------- BlockSpec helpers -----------------------------
def _rep_spec(shape):
    shape = tuple(shape)
    return pl.BlockSpec(shape, lambda *args: (0,) * len(shape))


def _bat_spec(shape):
    rest = tuple(shape[1:])
    return pl.BlockSpec((1,) + rest, lambda b, *args: (b,) + (0,) * len(rest))


def _cparams(n_axes):
    return pltpu.CompilerParams(dimension_semantics=("parallel",) * n_axes,
                                vmem_limit_bytes=_vmem_budget_bytes())


# ----------------------------- Kernel 1: FeedForward (+ residual) -----------------------------
def _make_ff_kernel(T, D, K, dff):
    def kernel(x_ref, g_ref, b_ref, w1_ref, b1_ref, w2_ref, b2_ref, o_ref, pad_ref):
        x = x_ref[0]                                               # (T, D) f32
        xn = _layer_norm(x, g_ref[...], b_ref[...])
        # zero-padded bf16 scratch: tap k is a static slice read, no roll/iota/select per tap
        pad_ref[...] = jnp.zeros(pad_ref.shape, pad_ref.dtype)
        pad_ref[K // 2:K // 2 + T, :] = xn.astype(jnp.bfloat16)
        xcat = jnp.concatenate([pad_ref[k:k + T, :] for k in range(K)], axis=-1)  # (T, K*D) bf16
        # Conv1d(D -> 4D, kernel K, padding K//2) as one deep-contraction matmul
        h = jnp.dot(xcat, w1_ref[...], preferred_element_type=jnp.float32) + b1_ref[...]
        h = _leaky_relu(h)                                         # LeakyReLU(0.3); dropout = identity
        y = jnp.dot(h.astype(jnp.bfloat16), w2_ref[...],
                    preferred_element_type=jnp.float32) + b2_ref[...]
        o_ref[0] = x + 0.5 * y                                     # FF returns 0.5*x; block adds residual
    return kernel


def feed_forward(x, p):
    B, T, D = x.shape
    dff = p["w2"].shape[0]
    K = p["w1"].shape[0] // D
    return pl.pallas_call(
        _make_ff_kernel(T, D, K, dff),
        out_shape=jax.ShapeDtypeStruct((B, T, D), jnp.float32),
        grid=(B,),
        in_specs=[_bat_spec(x.shape),
                  _rep_spec(p["ln_g"].shape), _rep_spec(p["ln_b"].shape),
                  _rep_spec(p["w1"].shape), _rep_spec(p["b1"].shape),
                  _rep_spec(p["w2"].shape), _rep_spec(p["b2"].shape)],
        out_specs=_bat_spec((B, T, D)),
        scratch_shapes=[pltpu.VMEM((T + K - 1, D), jnp.bfloat16)],
        compiler_params=_cparams(1),
    )(x, p["ln_g"], p["ln_b"], p["w1"], p["b1"], p["w2"], p["b2"])


# ----------------------------- Kernel 2: ConformerConvModule (+ residual) -----------------------------
def _make_conv_kernel(T, D, K, inner):
    def kernel(x_ref, g_ref, b_ref, wgo_ref, bgo_ref, wgg_ref, bgg_ref,
               wdw_ref, bdw_ref, gng_ref, gnb_ref, wpw2_ref, bpw2_ref, o_ref, pad_ref):
        x = x_ref[0]                                               # (T, D) f32
        xn = _layer_norm(x, g_ref[...], b_ref[...])
        xb = xn.astype(jnp.bfloat16)
        # pointwise conv D -> 2*inner, split at init into (out, gate) halves
        out_half = jnp.dot(xb, wgo_ref[...], preferred_element_type=jnp.float32) + bgo_ref[...]
        gate = jnp.dot(xb, wgg_ref[...], preferred_element_type=jnp.float32) + bgg_ref[...]
        g = out_half * _leaky_relu(gate)                           # GLUActivation (leaky-relu gate)
        # depthwise conv, kernel K, padding K//2: padded scratch + K static slice reads
        pad_ref[...] = jnp.zeros(pad_ref.shape, pad_ref.dtype)
        pad_ref[K // 2:K // 2 + T, :] = g
        d = jnp.zeros((T, inner), jnp.float32)
        for k in range(K):
            d = d + pad_ref[k:k + T, :] * wdw_ref[k:k + 1, :]
        d = d + bdw_ref[...]
        # GroupNorm(1, inner): stats over all (T, inner) per sample (padded frames included,
        # matching PyTorch), per-channel affine
        mu = jnp.mean(d)
        var = jnp.mean(jnp.square(d - mu))
        dn = (d - mu) * lax.rsqrt(var + LN_EPS) * gng_ref[...] + gnb_ref[...]
        s = dn * jax.nn.sigmoid(dn)                                # SiLU
        y = jnp.dot(s.astype(jnp.bfloat16), wpw2_ref[...],
                    preferred_element_type=jnp.float32) + bpw2_ref[...]
        o_ref[0] = x + y                                           # dropout identity; residual add
    return kernel


_CONV_PARAM_NAMES = ("ln_g", "ln_b", "w_glu_out", "b_glu_out", "w_glu_gate", "b_glu_gate",
                     "w_dw", "b_dw", "gn_g", "gn_b", "w_pw2", "b_pw2")


def conv_module(x, p):
    B, T, D = x.shape
    K, inner = p["w_dw"].shape
    return pl.pallas_call(
        _make_conv_kernel(T, D, K, inner),
        out_shape=jax.ShapeDtypeStruct((B, T, D), jnp.float32),
        grid=(B,),
        in_specs=[_bat_spec(x.shape)] + [_rep_spec(p[n].shape) for n in _CONV_PARAM_NAMES],
        out_specs=_bat_spec((B, T, D)),
        scratch_shapes=[pltpu.VMEM((T + K - 1, inner), jnp.float32)],
        compiler_params=_cparams(1),
    )(x, *[p[n] for n in _CONV_PARAM_NAMES])


# ----------------------------- Kernel 3: positional projection (one matmul, once per block) -----------
def _make_pos_kernel(T, D, H, Dh):
    def kernel(enc_ref, wp_ref, o_ref):
        p = jnp.dot(enc_ref[...].astype(jnp.bfloat16), wp_ref[...],
                    preferred_element_type=jnp.float32)            # (T, D)
        for h in range(H):                                         # head split: static lane slices
            o_ref[h] = p[:, h * Dh:(h + 1) * Dh].astype(jnp.bfloat16)
    return kernel


def pos_projection(enc, p_attn, H):
    T, D = enc.shape
    Dh = D // H
    return pl.pallas_call(
        _make_pos_kernel(T, D, H, Dh),
        out_shape=jax.ShapeDtypeStruct((H, T, Dh), jnp.bfloat16),
        compiler_params=pltpu.CompilerParams(vmem_limit_bytes=_vmem_budget_bytes()),
    )(enc, p_attn["wp"])


# ----------------------------- Kernel 4: block LN + fused QKV projection -----------------------------
def _make_qkv_kernel(T, D, H, Dh):
    def kernel(x_ref, g_ref, b_ref, wqkv_ref, bq_ref, ub_ref, vb_ref,
               qu_ref, qv_ref, k_ref, v_ref):
        x = x_ref[0]                                               # (T, D) f32
        xn = _layer_norm(x, g_ref[...], b_ref[...])                # block-level self.ln
        xb = xn.astype(jnp.bfloat16)
        qkv = jnp.dot(xb, wqkv_ref[...], preferred_element_type=jnp.float32)   # (T, 3D) lane-dense
        q = qkv[:, 0 * D:1 * D] + bq_ref[...]                      # query_proj has a bias
        k = qkv[:, 1 * D:2 * D]                                    # key/value/pos projections: no bias
        v = qkv[:, 2 * D:3 * D]
        for h in range(H):                                         # head split once per batch element
            sl = slice(h * Dh, (h + 1) * Dh)
            qh = q[:, sl]
            qu_ref[0, h] = (qh + ub_ref[h]).astype(jnp.bfloat16)   # content query (+u bias)
            qv_ref[0, h] = (qh + vb_ref[h]).astype(jnp.bfloat16)   # positional query (+v bias)
            k_ref[0, h] = k[:, sl].astype(jnp.bfloat16)
            v_ref[0, h] = v[:, sl].astype(jnp.bfloat16)
    return kernel


def qkv_projection(x, p):
    B, T, D = x.shape
    H = p["u"].shape[0]
    Dh = D // H
    out_sh = jax.ShapeDtypeStruct((B, H, T, Dh), jnp.bfloat16)
    return pl.pallas_call(
        _make_qkv_kernel(T, D, H, Dh),
        out_shape=(out_sh, out_sh, out_sh, out_sh),
        grid=(B,),
        in_specs=[_bat_spec(x.shape),
                  _rep_spec(p["ln_g"].shape), _rep_spec(p["ln_b"].shape),
                  _rep_spec(p["w_qkv"].shape), _rep_spec(p["bq"].shape),
                  _rep_spec(p["u"].shape), _rep_spec(p["v"].shape)],
        out_specs=(_bat_spec((B, H, T, Dh)),) * 4,
        compiler_params=_cparams(1),
    )(x, p["ln_g"], p["ln_b"], p["w_qkv"], p["bq"], p["u"], p["v"])


# ----------------------------- Kernel 5: relative MHSA, query-tiled -----------------------------
# content/pos scores for a (H, Tq, T) query tile, tile-exact Transformer-XL relative shift,
# key-padding mask, full-key softmax, context, fused out-projection, residual, output zero-mask.
def _make_attn_kernel(T, Tq, D, H, Dh, n_q):
    scale = 1.0 / math.sqrt(float(D))                              # repo scales by sqrt(d_model)

    def kernel(xres_ref, qu_ref, qv_ref, qvb_ref, k_ref, v_ref, pos_ref,
               km_ref, sm_ref, wo_ref, bo_ref, o_ref):
        qi = pl.program_id(1)
        q0 = qi * Tq

        x = xres_ref[0]                                            # (Tq, D) f32 residual
        qu = qu_ref[0]                                             # (H, Tq, Dh) bf16
        qv = qv_ref[0]                                             # (H, Tq, Dh) bf16
        kf = k_ref[0]                                              # (H, T, Dh) bf16 (resident)
        vf = v_ref[0]                                              # (H, T, Dh) bf16 (resident)
        pos = pos_ref[...]                                         # (H, T, Dh) bf16 (resident)

        content = jnp.einsum('htk,hsk->hts', qu, kf,
                             preferred_element_type=jnp.float32)   # (H, Tq, T)
        P = jnp.einsum('htk,hsk->hts', qv, pos,
                       preferred_element_type=jnp.float32)         # (H, Tq, T)
        # positional score of the boundary query row (q0+Tq, clamped), gathered outside the kernel
        qnext = qvb_ref[0, 0][:, None, :]                          # (H, 1, Dh) bf16
        pnext = jnp.einsum('hxk,hsk->hxs', qnext, pos,
                           preferred_element_type=jnp.float32)     # (H, 1, T)

        # ---- Transformer-XL relative shift (exact pad/reshape/slice equivalent), tile-local ----
        # shifted[a,b] = P[a, b+T-1-a] for b<=a ; 0 for b==a+1 ; P[a+1, b-a-2] for b>a+1  (a global)
        rows = lax.broadcasted_iota(jnp.int32, (1, Tq, 1), 1)      # local row index
        cols = lax.broadcasted_iota(jnp.int32, (1, 1, T), 2)       # key/column index
        qp = jnp.roll(P, Tq - 1, axis=1)                           # qp[a] = P[a+1] (last row fixed next)
        qp = jnp.where(rows == Tq - 1, pnext, qp)
        qp = jnp.roll(qp, 1, axis=2)                               # qp[a,c] = P[a+1, c-1]
        a_glob = rows + q0
        m = jnp.where(cols >= (T - 1) - a_glob, P,
                      jnp.where(cols == 0, 0.0, qp))
        # per-row right roll by (1 + q0 + a_local), decomposed into static-shift rolls
        sh = jnp.roll(m, 1 % T, axis=2)
        bit = 1
        while bit < n_q:                                           # roll by q0 via bits of qi
            sh = jnp.where((qi & bit) != 0, jnp.roll(sh, (Tq * bit) % T, axis=2), sh)
            bit <<= 1
        bit = 1
        while bit < Tq:                                            # roll by a_local via row bits
            sh = jnp.where((rows & bit) != 0, jnp.roll(sh, bit % T, axis=2), sh)
            bit <<= 1

        score = (content + sh) * scale
        km = km_ref[0]                                             # (1, T) int32, 1 = masked key
        score = jnp.where(km[None, :, :] != 0, NEG_INF, score)
        score = score - jnp.max(score, axis=-1, keepdims=True)
        w = jnp.exp(score)
        w = w * pl.reciprocal(jnp.sum(w, axis=-1, keepdims=True), approx=True)

        ctx = jnp.einsum('hts,hsk->htk', w.astype(jnp.bfloat16), vf,
                         preferred_element_type=jnp.float32)       # (H, Tq, Dh)
        ctx2 = jnp.concatenate([ctx[h] for h in range(H)], axis=-1)  # (Tq, H*Dh) head-major
        y = jnp.dot(ctx2.astype(jnp.bfloat16), wo_ref[...],
                    preferred_element_type=jnp.float32) + bo_ref[...]  # fused out_proj
        out = y + x                                                # + res (pre-LN residual)
        sm = sm_ref[0]                                             # (Tq, 1) int32, 1 = padded frame
        o_ref[0] = jnp.where(sm != 0, 0.0, out)                    # x.masked_fill(mask.unsqueeze(-1), 0)
    return kernel


def rel_mhsa(x, p, pos_heads, key_mask, seq_mask):
    B, T, D = x.shape
    H = p["u"].shape[0]
    Dh = D // H
    Tq = _pick_q_tile(T, H)
    assert T % Tq == 0
    n_q = T // Tq

    qu, qv, k, v = qkv_projection(x, p)
    # boundary query rows (one per query tile), gathered once outside the kernels
    nxt_idx = jnp.minimum((jnp.arange(n_q, dtype=jnp.int32) + 1) * Tq, T - 1)
    qv_bound = jnp.transpose(qv[:, :, nxt_idx, :], (0, 2, 1, 3))   # (B, n_q, H, Dh) bf16

    full_hd = pl.BlockSpec((1, H, T, Dh), lambda b, qi: (b, 0, 0, 0))   # resident across q tiles
    tile_hd = pl.BlockSpec((1, H, Tq, Dh), lambda b, qi: (b, 0, qi, 0))

    return pl.pallas_call(
        _make_attn_kernel(T, Tq, D, H, Dh, n_q),
        out_shape=jax.ShapeDtypeStruct((B, T, D), jnp.float32),
        grid=(B, n_q),
        in_specs=[pl.BlockSpec((1, Tq, D), lambda b, qi: (b, qi, 0)),        # residual tile
                  tile_hd,                                                   # qu tile
                  tile_hd,                                                   # qv tile
                  pl.BlockSpec((1, 1, H, Dh), lambda b, qi: (b, qi, 0, 0)),  # boundary qv row
                  full_hd,                                                   # k (full, resident)
                  full_hd,                                                   # v (full, resident)
                  pl.BlockSpec((H, T, Dh), lambda b, qi: (0, 0, 0)),         # pos (shared)
                  pl.BlockSpec((1, 1, T), lambda b, qi: (b, 0, 0)),          # key-padding mask
                  pl.BlockSpec((1, Tq, 1), lambda b, qi: (b, qi, 0)),        # output mask tile
                  _rep_spec(p["wo"].shape), _rep_spec(p["bo"].shape)],
        out_specs=pl.BlockSpec((1, Tq, D), lambda b, qi: (b, qi, 0)),
        compiler_params=pltpu.CompilerParams(
            dimension_semantics=("parallel", "parallel"),
            vmem_limit_bytes=_vmem_budget_bytes()),
    )(x, qu, qv, qv_bound, k, v, pos_heads, key_mask, seq_mask, p["wo"], p["bo"])


# ----------------------------- full ConformerBlock forward -----------------------------
def conformer_block_forward(params, x, mask, slf_attn_mask, encoding, with_ff=True):
    B, T, D = x.shape
    if with_ff:
        x = feed_forward(x, params["ff"])                          # x = ff(x) + x
    x = conv_module(x, params["conv1"])                            # x = conv1(x) + x
    H = params["attn"]["u"].shape[0]
    enc = encoding[0, :T, :]                                       # encoding[:, :T] (shared by batches)
    pos_heads = pos_projection(enc, params["attn"], H)
    # delightful_tts: slf_attn_mask is the key-padding mask broadcast over queries; keep only the
    # key row so no (B, T, T) mask is DMA'd into the kernel.
    key_mask = slf_attn_mask[:, :1, :].astype(jnp.int32)           # (B, 1, T)
    seq_mask = mask.reshape(B, T, 1).astype(jnp.int32)             # (B, T, 1)
    x = rel_mhsa(x, params["attn"], pos_heads, key_mask, seq_mask)
    x = conv_module(x, params["conv2"])                            # return conv2(x) + x
    return x


# ----------------------------- deterministic parameter init (torch layouts -> kernel layouts) ---------
def init_params(key, d_model, n_head, kernel_size_conv_mod, with_ff=True,
                ff_kernel=3, expansion=2, ff_expansion=4):
    assert kernel_size_conv_mod % 2 == 1 and ff_kernel % 2 == 1
    D, H = d_model, n_head
    assert D % H == 0
    inner = D * expansion
    Dh = D // H
    keys = iter(jax.random.split(key, 64))

    def nrm(shape, scale=0.1):
        return scale * jax.random.normal(next(keys), shape, jnp.float32)

    def bf(a):
        return a.astype(jnp.bfloat16)                              # MXU operands stored in bf16

    params = {}
    if with_ff:
        dff = ff_expansion * D
        w1 = nrm((dff, D, ff_kernel))                              # Conv1d(D, 4D, K).weight
        b1 = nrm((dff,))
        w2 = nrm((D, dff, 1))                                      # Conv1d(4D, D, 1).weight
        b2 = nrm((D,))
        w1_stacked = jnp.concatenate([w1[:, :, k].T for k in range(ff_kernel)], axis=0)  # (K*D, dff)
        params["ff"] = dict(
            ln_g=jnp.ones((1, D), jnp.float32), ln_b=jnp.zeros((1, D), jnp.float32),
            w1=bf(w1_stacked), b1=b1.reshape(1, -1),
            w2=bf(w2[:, :, 0].T), b2=b2.reshape(1, -1))

    def conv_mod_params():
        pw1 = nrm((2 * inner, D, 1)); pb1 = nrm((2 * inner,))
        dw = nrm((inner, 1, kernel_size_conv_mod)); db = nrm((inner,))
        pw2 = nrm((D, inner, 1)); pb2 = nrm((D,))
        w_pw1 = pw1[:, :, 0].T                                     # (D, 2*inner)
        return dict(
            ln_g=jnp.ones((1, D), jnp.float32), ln_b=jnp.zeros((1, D), jnp.float32),
            w_glu_out=bf(w_pw1[:, :inner]), b_glu_out=pb1[:inner].reshape(1, -1),
            w_glu_gate=bf(w_pw1[:, inner:]), b_glu_gate=pb1[inner:].reshape(1, -1),
            w_dw=dw[:, 0, :].T, b_dw=db.reshape(1, -1),            # (K, inner) f32 elementwise taps
            gn_g=jnp.ones((1, inner), jnp.float32), gn_b=jnp.zeros((1, inner), jnp.float32),
            w_pw2=bf(pw2[:, :, 0].T), b_pw2=pb2.reshape(1, -1))

    params["conv1"] = conv_mod_params()
    params["conv2"] = conv_mod_params()

    Wq = nrm((D, D)); bq = nrm((D,))
    Wk = nrm((D, D)); Wv = nrm((D, D)); Wp = nrm((D, D))
    Wo = nrm((D, D)); bo = nrm((D,))
    u = nrm((H, Dh)); vb = nrm((H, Dh))
    w_qkv = jnp.concatenate([Wq.T, Wk.T, Wv.T], axis=1)            # (D, 3D): y = x @ [Wq.T|Wk.T|Wv.T]
    params["attn"] = dict(
        ln_g=jnp.ones((1, D), jnp.float32), ln_b=jnp.zeros((1, D), jnp.float32),  # block self.ln
        w_qkv=bf(w_qkv), bq=bq.reshape(1, -1),
        u=u.reshape(H, 1, Dh), v=vb.reshape(H, 1, Dh),
        wp=bf(Wp.T),                                               # pos_proj (bias=False)
        wo=bf(Wo.T), bo=bo.reshape(1, -1))                         # out_proj (with bias)
    return params


if __name__ == "__main__":
    B, T, D, H, K = 2, 16, 32, 2, 7
    key = jax.random.PRNGKey(0)
    pkey, xkey, ekey = jax.random.split(key, 3)

    params = init_params(pkey, d_model=D, n_head=H, kernel_size_conv_mod=K, with_ff=True)
    x = jax.random.normal(xkey, (B, T, D), jnp.float32)
    encoding = jax.random.normal(ekey, (1, 2 * T, D), jnp.float32)   # positional-encoding table

    lengths = jnp.array([T, T - 4])
    seq_mask = (jnp.arange(T)[None, :] >= lengths[:, None])          # (B, T), True = padded
    slf_attn_mask = jnp.broadcast_to(seq_mask[:, None, :], (B, T, T))

    out = conformer_block_forward(
        params, x,
        mask=seq_mask,                                               # (B, T) bool
        slf_attn_mask=slf_attn_mask,                                 # (B, T, T) bool (key-pad broadcast)
        encoding=encoding, with_ff=True)

    jax.block_until_ready(out)
    assert out.shape == (B, T, D) and out.dtype == jnp.float32
    print("KERNEL_OK")
</pallas_src>

<mosaic_0001>
module attributes {stable_mosaic.version = 11 : i64} {
  func.func @kernel(%arg0: i32, %arg1: memref<1x16x32xf32, #tpu.memory_space<vmem>>, %arg2: memref<1x32xf32, #tpu.memory_space<vmem>>, %arg3: memref<1x32xf32, #tpu.memory_space<vmem>>, %arg4: memref<96x128xbf16, #tpu.memory_space<vmem>>, %arg5: memref<1x128xf32, #tpu.memory_space<vmem>>, %arg6: memref<128x32xbf16, #tpu.memory_space<vmem>>, %arg7: memref<1x32xf32, #tpu.memory_space<vmem>>, %arg8: memref<1x16x32xf32, #tpu.memory_space<vmem>>, %arg9: memref<18x32xbf16, #tpu.memory_space<vmem>>) attributes {dimension_semantics = [#tpu.dimension_semantics<parallel>], iteration_bounds = array<i64: 2>, scalar_prefetch = 0 : i64, scratch_operands = 1 : i64, tpu.core_type = #tpu.core_type<tc>, window_params = [{transform_indices = @transform_0, window_bounds = array<i64: 1, 16, 32>}, {pipeline_mode = #tpu.pipeline_mode<synchronous>, transform_indices = @transform_1, window_bounds = array<i64: 1, 32>}, {pipeline_mode = #tpu.pipeline_mode<synchronous>, transform_indices = @transform_2, window_bounds = array<i64: 1, 32>}, {pipeline_mode = #tpu.pipeline_mode<synchronous>, transform_indices = @transform_3, window_bounds = array<i64: 96, 128>}, {pipeline_mode = #tpu.pipeline_mode<synchronous>, transform_indices = @transform_4, window_bounds = array<i64: 1, 128>}, {pipeline_mode = #tpu.pipeline_mode<synchronous>, transform_indices = @transform_5, window_bounds = array<i64: 128, 32>}, {pipeline_mode = #tpu.pipeline_mode<synchronous>, transform_indices = @transform_6, window_bounds = array<i64: 1, 32>}, {transform_indices = @transform_7, window_bounds = array<i64: 1, 16, 32>}]} {
    %c0 = arith.constant 0 : index
    %c0_0 = arith.constant 0 : index
    %c0_1 = arith.constant 0 : index
    %0 = vector.load %arg1[%c0, %c0_0, %c0_1] : memref<1x16x32xf32, #tpu.memory_space<vmem>>, vector<1x16x32xf32>
    %1 = vector.shape_cast %0 : vector<1x16x32xf32> to vector<16x32xf32>
    %c0_2 = arith.constant 0 : index
    %c0_3 = arith.constant 0 : index
    %2 = vector.load %arg2[%c0_2, %c0_3] : memref<1x32xf32, #tpu.memory_space<vmem>>, vector<1x32xf32>
    %c0_4 = arith.constant 0 : index
    %c0_5 = arith.constant 0 : index
    %3 = vector.load %arg3[%c0_4, %c0_5] : memref<1x32xf32, #tpu.memory_space<vmem>>, vector<1x32xf32>
    %cst = arith.constant dense<0.000000e+00> : vector<16xf32>
    %4 = vector.multi_reduction <add>, %1, %cst [1] : vector<16x32xf32> to vector<16xf32>
    %5 = vector.shape_cast %4 : vector<16xf32> to vector<16x1xf32>
    %cst_6 = arith.constant 3.200000e+01 : f32
    %6 = vector.broadcast %cst_6 : f32 to vector<16x1xf32>
    %7 = arith.divf %5, %6 : vector<16x1xf32>
    %8 = vector.broadcast %7 : vector<16x1xf32> to vector<16x32xf32>
    %9 = arith.subf %1, %8 : vector<16x32xf32>
    %10 = arith.mulf %9, %9 : vector<16x32xf32>
    %cst_7 = arith.constant dense<0.000000e+00> : vector<16xf32>
    %11 = vector.multi_reduction <add>, %10, %cst_7 [1] : vector<16x32xf32> to vector<16xf32>
    %12 = vector.shape_cast %11 : vector<16xf32> to vector<16x1xf32>
    %cst_8 = arith.constant 3.200000e+01 : f32
    %13 = vector.broadcast %cst_8 : f32 to vector<16x1xf32>
    %14 = arith.divf %12, %13 : vector<16x1xf32>
    %15 = vector.broadcast %7 : vector<16x1xf32> to vector<16x32xf32>
    %16 = arith.subf %1, %15 : vector<16x32xf32>
    %cst_9 = arith.constant 9.99999974E-6 : f32
    %17 = vector.broadcast %cst_9 : f32 to vector<16x1xf32>
    %18 = arith.addf %14, %17 : vector<16x1xf32>
    %19 = math.rsqrt %18 : vector<16x1xf32>
    %20 = vector.broadcast %19 : vector<16x1xf32> to vector<16x32xf32>
    %21 = arith.mulf %16, %20 : vector<16x32xf32>
    %22 = vector.broadcast %2 : vector<1x32xf32> to vector<16x32xf32>
    %23 = arith.mulf %21, %22 : vector<16x32xf32>
    %24 = vector.broadcast %3 : vector<1x32xf32> to vector<16x32xf32>
    %25 = arith.addf %23, %24 : vector<16x32xf32>
    %cst_10 = arith.constant 0.000000e+00 : bf16
    %26 = vector.broadcast %cst_10 : bf16 to vector<18x32xbf16>
    %c0_11 = arith.constant 0 : index
    %c0_12 = arith.constant 0 : index
    %27 = vector.load %arg9[%c0_11, %c0_12] : memref<18x32xbf16, #tpu.memory_space<vmem>>, vector<18x32xbf16>
    tpu.vector_store %arg9[%c0_11, %c0_12], %26 {strides = array<i32>} : memref<18x32xbf16, #tpu.memory_space<vmem>>, vector<18x32xbf16>,
    %28 = arith.truncf %25 : vector<16x32xf32> to vector<16x32xbf16>
    %c1 = arith.constant 1 : index
    %c0_13 = arith.constant 0 : index
    %29 = vector.load %arg9[%c1, %c0_13] : memref<18x32xbf16, #tpu.memory_space<vmem>>, vector<16x32xbf16>
    tpu.vector_store %arg9[%c1, %c0_13], %28 {strides = array<i32>} : memref<18x32xbf16, #tpu.memory_space<vmem>>, vector<16x32xbf16>,
    %c0_14 = arith.constant 0 : index
    %c0_15 = arith.constant 0 : index
    %30 = vector.load %arg9[%c0_14, %c0_15] : memref<18x32xbf16, #tpu.memory_space<vmem>>, vector<16x32xbf16>
    %c1_16 = arith.constant 1 : index
    %c0_17 = arith.constant 0 : index
    %31 = vector.load %arg9[%c1_16, %c0_17] : memref<18x32xbf16, #tpu.memory_space<vmem>>, vector<16x32xbf16>
    %c2 = arith.constant 2 : index
    %c0_18 = arith.constant 0 : index
    %32 = vector.load %arg9[%c2, %c0_18] : memref<18x32xbf16, #tpu.memory_space<vmem>>, vector<16x32xbf16>
    %33 = tpu.concatenate %30, %31, %32 in 1 : vector<16x32xbf16>, vector<16x32xbf16>, vector<16x32xbf16> -> vector<16x96xbf16>
    %c0_19 = arith.constant 0 : index
    %c0_20 = arith.constant 0 : index
    %34 = vector.load %arg4[%c0_19, %c0_20] : memref<96x128xbf16, #tpu.memory_space<vmem>>, vector<96x128xbf16>
    %cst_21 = arith.constant dense<0.000000e+00> : vector<16x128xf32>
    %35 = tpu.matmul %33, %34, %cst_21 {dimension_numbers = #tpu.dot_dimension_numbers<[1], [0], [0], [1], [0, 0, 1, 1], [], []>} : vector<16x96xbf16>, vector<96x128xbf16>, vector<16x128xf32> -> vector<16x128xf32>
    %c0_22 = arith.constant 0 : index
    %c0_23 = arith.constant 0 : index
    %36 = vector.load %arg5[%c0_22, %c0_23] : memref<1x128xf32, #tpu.memory_space<vmem>>, vector<1x128xf32>
    %37 = vector.broadcast %36 : vector<1x128xf32> to vector<16x128xf32>
    %38 = arith.addf %35, %37 : vector<16x128xf32>
    %cst_24 = arith.constant 0.000000e+00 : f32
    %39 = vector.broadcast %cst_24 : f32 to vector<16x128xf32>
    %40 = arith.cmpf oge, %38, %39 : vector<16x128xf32>
    %cst_25 = arith.constant 3.000000e-01 : f32
    %41 = vector.broadcast %cst_25 : f32 to vector<16x128xf32>
    %42 = arith.mulf %41, %38 : vector<16x128xf32>
    %43 = arith.select %40, %38, %42 : vector<16x128xi1>, vector<16x128xf32>
    %44 = arith.truncf %43 : vector<16x128xf32> to vector<16x128xbf16>
    %c0_26 = arith.constant 0 : index
    %c0_27 = arith.constant 0 : index
    %45 = vector.load %arg6[%c0_26, %c0_27] : memref<128x32xbf16, #tpu.memory_space<vmem>>, vector<128x32xbf16>
    %cst_28 = arith.constant dense<0.000000e+00> : vector<16x32xf32>
    %46 = tpu.matmul %44, %45, %cst_28 {dimension_numbers = #tpu.dot_dimension_numbers<[1], [0], [0], [1], [0, 0, 1, 1], [], []>} : vector<16x128xbf16>, vector<128x32xbf16>, vector<16x32xf32> -> vector<16x32xf32>
    %c0_29 = arith.constant 0 : index
    %c0_30 = arith.constant 0 : index
    %47 = vector.load %arg7[%c0_29, %c0_30] : memref<1x32xf32, #tpu.memory_space<vmem>>, vector<1x32xf32>
    %48 = vector.broadcast %47 : vector<1x32xf32> to vector<16x32xf32>
    %49 = arith.addf %46, %48 : vector<16x32xf32>
    %cst_31 = arith.constant 5.000000e-01 : f32
    %50 = vector.broadcast %cst_31 : f32 to vector<16x32xf32>
    %51 = arith.mulf %50, %49 : vector<16x32xf32>
    %52 = arith.addf %1, %51 : vector<16x32xf32>
    %c0_32 = arith.constant 0 : index
    %c0_33 = arith.constant 0 : index
    %c0_34 = arith.constant 0 : index
    %53 = vector.load %arg8[%c0_32, %c0_33, %c0_34] : memref<1x16x32xf32, #tpu.memory_space<vmem>>, vector<1x16x32xf32>
    %54 = vector.shape_cast %53 : vector<1x16x32xf32> to vector<16x32xf32>
    %55 = vector.shape_cast %52 : vector<16x32xf32> to vector<1x16x32xf32>
    tpu.vector_store %arg8[%c0_32, %c0_33, %c0_34], %55 {strides = array<i32>} : memref<1x16x32xf32, #tpu.memory_space<vmem>>, vector<1x16x32xf32>,
    return
  }
  func.func @transform_0(%arg0: i32) -> (i32, i32, i32) {
    %c0_i32 = arith.constant 0 : i32
    %c0_i32_0 = arith.constant 0 : i32
    %c0_i32_1 = arith.constant 0 : i32
    return %arg0, %c0_i32, %c0_i32_0 : i32, i32, i32
  }
  func.func @transform_1(%arg0: i32) -> (i32, i32) {
    %c0_i32 = arith.constant 0 : i32
    %c0_i32_0 = arith.constant 0 : i32
    %c0_i32_1 = arith.constant 0 : i32
    return %c0_i32, %c0_i32_0 : i32, i32
  }
  func.func @transform_2(%arg0: i32) -> (i32, i32) {
    %c0_i32 = arith.constant 0 : i32
    %c0_i32_0 = arith.constant 0 : i32
    %c0_i32_1 = arith.constant 0 : i32
    return %c0_i32, %c0_i32_0 : i32, i32
  }
  func.func @transform_3(%arg0: i32) -> (i32, i32) {
    %c0_i32 = arith.constant 0 : i32
    %c0_i32_0 = arith.constant 0 : i32
    %c0_i32_1 = arith.constant 0 : i32
    return %c0_i32, %c0_i32_0 : i32, i32
  }
  func.func @transform_4(%arg0: i32) -> (i32, i32) {
    %c0_i32 = arith.constant 0 : i32
    %c0_i32_0 = arith.constant 0 : i32
    %c0_i32_1 = arith.constant 0 : i32
    return %c0_i32, %c0_i32_0 : i32, i32
  }
  func.func @transform_5(%arg0: i32) -> (i32, i32) {
    %c0_i32 = arith.constant 0 : i32
    %c0_i32_0 = arith.constant 0 : i32
    %c0_i32_1 = arith.constant 0 : i32
    return %c0_i32, %c0_i32_0 : i32, i32
  }
  func.func @transform_6(%arg0: i32) -> (i32, i32) {
    %c0_i32 = arith.constant 0 : i32
    %c0_i32_0 = arith.constant 0 : i32
    %c0_i32_1 = arith.constant 0 : i32
    return %c0_i32, %c0_i32_0 : i32, i32
  }
  func.func @transform_7(%arg0: i32) -> (i32, i32, i32) {
    %c0_i32 = arith.constant 0 : i32
    %c0_i32_0 = arith.constant 0 : i32
    %c0_i32_1 = arith.constant 0 : i32
    return %arg0, %c0_i32, %c0_i32_0 : i32, i32, i32
  }
}

</mosaic_0001>

<bundles_post_ra>
// kernel: tpu_custom_call.1
= control target key start
LH: loop header
LB: loop body
LE: loop exit
PB: predicated region body
PF: predicated region fallthrough
CT: control target
= control target key end

     0   :  { %12 = vsyncpa [#allocation4], 0  ;;  %s1283_s0 = inlined_call_operand.vmem [shape: f32[2,16,32], index: 0, kind: input, shape index: {}]   ;;  %s1284_s1 = inlined_call_operand.vmem [shape: f32[1,32], index: 1, kind: input, shape index: {}]   ;;  %s1285_s2 = inlined_call_operand.vmem [shape: f32[1,32], index: 2, kind: input, shape index: {}]   ;;  %s1286_s3 = inlined_call_operand.vmem [shape: bf16[96,128], index: 3, kind: input, shape index: {}]   ;;  %s1287_s4 = inlined_call_operand.hbm [shape: f32[1,128], index: 4, kind: input, shape index: {}]   ;;  %s1288_s5 = inlined_call_operand.vmem [shape: bf16[128,32], index: 5, kind: input, shape index: {}]   ;;  %s1289_s6 = inlined_call_operand.vmem [shape: f32[1,32], index: 6, kind: input, shape index: {}]   ;;  %s1290_s7 = inlined_call_operand.hbm [shape: f32[2,16,32], index: 7, kind: output, shape index: {}]  }
   0x1   :  { %13 = vsyncpa [#allocation5], 0 }
   0x2   :  { %15 = vsyncpa [#allocation5 + $0x1], 0  ;;  %s1055_s24 = smov 0   ;;  %s1057_s25 = smov 0  }
   0x3   :  { %s1059_s26 = smov 0   ;;  %s1061_s27 = smov 0  }
   0x4 LB: > { %s1076_s28 = sadd.s32 4294967295, %s1004_s27   ;;  %s738_s29 = sadd.s32 4294967294, %s1004_s27   ;;  %s1004_s27 = sphi %s1061_s27, %s1306_s27   ;;  %s1000_s26 = sphi %s1059_s26, %s1305_s26   ;;  %s996_s25 = sphi %s1057_s25, %s1304_s25   ;;  %s992_s24 = sphi %s1055_s24, %s1303_s24  }
   0x5   : > { %s1080_s30 = sadd.s32 1, %s1004_s27   ;;  %s180_s8 = sadd.s32 1, %s1000_s26 }
   0x6   : > { %s177_s9 = ssub.s32 %s1004_s27, %s1080_s30  ;;  %p190_p0 = scmp.ne.s32.totalorder %s1000_s26, %s996_s25 }
   0x7   : > { %p178_p1 = scmp.eq.s32.totalorder %s177_s9, 0  ;;  %p191_p2 = scmp.eq.s32.totalorder %s1076_s28, 1 }
   0x8   : > { %p196_p3 = scmp.ne.s32.totalorder %s996_s25, %s992_s24  ;;  %p197_p4 = scmp.eq.s32.totalorder %s738_s29, 1 }
   0x9   : > { %s1091_s10 = scalar_select %p178_p1, %s1000_s26, %s180_s8  }
   0xa   : > { %p1093_p5 = por %p191_p2, %p190_p0  ;;  %p1097_p6 = por %p197_p4, %p196_p3 }
   0xb   : > { %p739_p7 = scmp.ge.s32.totalorder %s1004_s27, 1  ;;  %p204_p8 = scmp.lt.s32.totalorder %s1004_s27, 3 }
   0xc   : > { %s1294_s11 = scalar_select %p1093_p5, 1, 0 }
   0xd   : > { %s1295_s12 = scalar_select %p1097_p6, 1, 0 }
   0xe   : > { %p1291_p9 = scmp.eq.s32.totalorder %s1076_s28, 0  ;;  %p1104_p10 = pnand %p739_p7, %p204_p8 }
   0xf   : > { %s1006_s14 = smov [#allocation3]   ;;  %s910_s19 = scalar_lea.hbm %s1287_s4, 16 }
  0x10   : > { %s1296_s13 = scalar_select %p1104_p10, 1, 0 }
  0x11   : > { %s226_s15 = sshll.u32 %s1006_s14, 4  ;;  %p838_p11 = pneg %p1104_p10  ;;  %s227_s15 = int_to_ptr.vmem [resolvable:$true] %s226_s15 }
  0x12   : > { %p911_p13 = scmp.ne.s32.totalorder %s1287_s4, %s910_s19  ;;  %p917_p3 = scmp.lt.u32.totalorder %s910_s19, %s1287_s4 }
  0x13   : > { %p1112_p12 = pnand %p1291_p9, %p838_p11 }
  0x15   : > { %p912_p0 = pneg %p1112_p12 }
  0x17   : > { %p913_p1 = pnand %p912_p0, %p911_p13 }
  0x19   : > { %p914_p2 = pneg %p913_p1 }
  0x1b   : > { %p919_p4 = pnand %p917_p3, %p914_p2 }
  0x1d   : > { %922 = shalt.err (!%p919_p4)
}
  0x1e   : > { %s923_s29 = scalar_lea.vmem %s227_s15, 16  ;;  %s930_s8 = scalar_lea.vmem %s227_s15, 32 }
  0x1f   : > { %p924_p7 = scmp.ne.s32.totalorder %s227_s15, %s923_s29  ;;  %p931_p9 = scmp.lt.s32.totalorder %s227_s15, %s227_s15 }
  0x20   : > { %p932_p6 = scmp.lt.s32.totalorder %s930_s8, %s923_s29 }
  0x21   : > { %p926_p8 = pnand %p924_p7, %p912_p0 }
  0x22   : > { %p933_p5 = por %p932_p6, %p931_p9 }
  0x23   : > { %p927_p11 = pneg %p926_p8 }
  0x25   : > { %p934_p10 = pnand %p933_p5, %p927_p11 }
  0x27   : > { %937 = shalt.err (!%p934_p10)
}
  0x28   : > { %841 = dma.hbm_to_vmem [thread:$0]  (!%p1112_p12), %s1287_s4, 16, %s227_s15, [#allocation4]  }
  0x29   : > { %p1298_p13 = scmp.ne.s32.totalorder %s1296_s13, 0 }
  0x2a   : > { %p1299_p1 = scmp.eq.s32.totalorder (!%p1298_p13), %s1076_s28, 0 }
  0x2b   : > { %253 = sbr.rel (%p1298_p13) target bundleno = 974 (0x3ce), region = 48 }
  0x32   : > { %983 = dma.done.wait (%p1299_p1), [#allocation4], 16   ;;  %p1300_p0 = pmov %p1299_p1 }
  0x33   : > { %p285_p6 = scmp.lt.s32.totalorder %s1076_s28, 1  ;;  %vm295_vm0 = vcmask 261120   ;;  %vm339_vm1 = vcmask 257024   ;;  %v1007_v4 = vmov 0   ;;  %vm342_vm2 = vcmask 253952   ;;  %v892_v15 = vld [vmem:[%s1286_s3] sm:$0xff]  }
  0x34   : > { %985 = vsyncadd (%p1300_p0), [#allocation4], 4294967280  ;;  %340 = vst.msk [vmem:[#allocation2] sm:$0xf] %vm339_vm1, %v1007_v4  ;;  %v1008_v16 = vmov 0.0   ;;  %v893_v17 = vld [vmem:[%s1286_s3 + $0x8] sm:$0xff]  }
  0x35   : > { %s286_s17 = scalar_select %p285_p6, %s1076_s28, 1  ;;  %341 = vst.msk [vmem:[#allocation2 + $0x4] sm:$0xf] %vm339_vm1, %v1007_v4  ;;  %796 = vmatprep.subr.bf16.mxu0 %v1008_v16  ;;  %812 = vmatprep.subr.bf16.mxu1 %v1008_v16  ;;  %v894_v18 = vld [vmem:[%s1286_s3 + $0x10] sm:$0xff]   ;;  %v895_v19 = vld [vmem:[%s1286_s3 + $0x18] sm:$0xff]   ;;  %v896_v20 = vld [vmem:[%s1286_s3 + $0x20] sm:$0xff]  }
  0x36   : > { %343 = vst.msk [vmem:[#allocation2 + $0x8] sm:$0x1] %vm342_vm2, %v1007_v4  ;;  %797 = vmatpush3.bf16.msra.mxu0 %v892_v15  ;;  %v747_v28 = vld [vmem:[%s1284_s1] ss:$0 sm:$0xff]  ;;  %vm374_vm3 = vsmask.f32 7938 }
  0x37   : > { %s776_s18 = sshll.u32 %s286_s17, 4  ;;  %798 = vmatprep.subr.bf16.mxu0 %v1008_v16  ;;  %v748_v30 = vld [vmem:[%s1285_s2] ss:$0 sm:$0xff]  ;;  %vm375_vm4 = vmand %vm339_vm1, %vm374_vm3  ;;  %vm350_vm5 = vsmask.f32 256  ;;  %v897_v54 = vld [vmem:[%s1286_s3 + $0x28] sm:$0xff]  }
  0x38   : > { %s289_s20 = scalar_lea.vmem %s1283_s0, %s776_s18  ;;  %vm351_vm6 = vsmask.f32 4368  ;;  %vm381_vm8 = vmand %vm342_vm2, %vm350_vm5  ;;  %vm1009_vm9 = vmmov 0   ;;  %v898_v56 = vld [vmem:[%s1288_s5] sm:$0xff]   ;;  %v899_v62 = vld [vmem:[%s1288_s5 + $0x8] sm:$0xff]   ;;  %vm415_vm10 = vcmask 1046528  }
  0x39   : > { %v1143_v0 = vld [vmem:[%s289_s20] sm:$0xff]  ;;  %v1145_v1 = vld [vmem:[%s289_s20 + $0x8] sm:$0xff]  ;;  %vm352_vm7 = vmor %vm350_vm5, %vm351_vm6  ;;  %808 = vmatprep.mubr.msk.bf16.mxu0 %vm1009_vm9, %v1008_v16  ;;  %828 = vmatprep.mubr.msk.bf16.mxu1 %vm1009_vm9, %v1008_v16  ;;  %s1010_s14 = smov 64   ;;  %vm397_vm11 = vsmask.f32 7424  ;;  %s1011_s19 = smov 32  }
  0x3a   : > { %v296_v2 = vsel %vm295_vm0, %v1143_v0, 0.0  ;;  %v299_v3 = vsel %vm295_vm0, %v1145_v1, 0.0  ;;  %799 = vmatpush3.bf16.msra.mxu0 %v893_v17  ;;  %813 = vmatpush3.bf16.msra.mxu1 %v898_v56  ;;  %vm423_vm12 = vcmask 523264   ;;  %vm481_vm13 = vcmask 785408   ;;  %s282_s8 = sand.u32 1, %s996_s25   ;;  %s779_s18 = sshll.u32 %s1076_s28, 8 }
  0x3b   : > { %297 = vadd.xlane.f32.xlu0 %v296_v2  ;;  %800 = vmatprep.subr.bf16.mxu0 %v1008_v16  ;;  %v376_v42 = vld [vmem:[#allocation2] sm:$0xf]  ;;  %s744_s9 = sshll.u32 %s282_s8, 4  ;;  %s1235_s15 = scalar_lea.hbm %s1290_s7, %s779_s18 }
  0x3c   : > { %814 = vmatprep.subr.bf16.mxu1 %v1008_v16  ;;  %s1242_s28 = scalar_lea.sflag [#allocation5], %s282_s8  ;;  %p1301_p9 = scmp.ne.s32.totalorder %s1294_s11, 0 }
  0x3d   : > { %v382_v48 = vld [vmem:[#allocation2 + $0x8] sm:$0x1]  ;;  %s1012_s22 = smov [#allocation6]  }
  0x3e   : > { %801 = vmatpush3.bf16.msra.mxu0 %v894_v18  ;;  %815 = vmatpush3.bf16.msra.mxu1 %v899_v62  ;;  %s942_s23 = sshll.u32 %s1012_s22, 4  ;;  %s943_s23 = int_to_ptr.vmem [resolvable:$false] %s942_s23 }
  0x3f   : > { %300 = vadd.xlane.f32.xlu0 %v299_v3  ;;  %802 = vmatprep.subr.bf16.mxu0 %v1008_v16  ;;  %s944_s29 = scalar_lea.vmem %s943_s23, 512 }
  0x40   : > { %816 = vmatprep.subr.bf16.mxu1 %v1008_v16 }
  0x42   : > { %803 = vmatpush3.bf16.msra.mxu0 %v895_v19 }
  0x43   : > { %804 = vmatprep.subr.bf16.mxu0 %v1008_v16 }
  0x46   : > { %805 = vmatpush3.bf16.msra.mxu0 %v896_v20  ;;  %v904_v20 = vld [vmem:[%s1288_s5 + $0x30] sm:$0xff]  }
  0x47   : > { %806 = vmatprep.subr.bf16.mxu0 %v1008_v16 }
  0x4a   : > { %807 = vmatpush3.bf16.msra.mxu0 %v897_v54 }
  0xc8   : > { %v298_v5 = vpop.xlane.xlu0 %297 }
  0xc9   : > { %v303_v6 = vmul.f32 0.03125, %v298_v5 }
  0xcb   : > { %v305_v7 = vsub.f32 %v1143_v0, %v303_v6 }
  0xcc   : > { %v301_v8 = vpop.xlane.xlu0 %300 }
  0xcd   : > { %v304_v9 = vmul.f32 0.03125, %v301_v8  ;;  %v307_v10 = vmul.f32 %v305_v7, %v305_v7  ;;  %v900_v8 = vld [vmem:[%s1288_s5 + $0x10] sm:$0xff]  }
  0xce   : > { %817 = vmatpush3.bf16.msra.mxu1 %v900_v8 }
  0xcf   : > { %v306_v11 = vsub.f32 %v1145_v1, %v304_v9  ;;  %v309_v12 = vsel %vm295_vm0, %v307_v10, 0.0  ;;  %818 = vmatprep.subr.bf16.mxu1 %v1008_v16 }
  0xd0   : > { %310 = vadd.xlane.f32.xlu1 %v309_v12  ;;  %v901_v12 = vld [vmem:[%s1288_s5 + $0x18] sm:$0xff]  }
  0xd1   : > { %v308_v13 = vmul.f32 %v306_v11, %v306_v11 }
  0xd2   : > { %819 = vmatpush3.bf16.msra.mxu1 %v901_v12 }
  0xd3   : > { %v312_v14 = vsel %vm295_vm0, %v308_v13, 0.0  ;;  %v902_v13 = vld [vmem:[%s1288_s5 + $0x20] sm:$0xff]   ;;  %820 = vmatprep.subr.bf16.mxu1 %v1008_v16 }
  0xd4   : > { %313 = vadd.xlane.f32.xlu1 %v312_v14  ;;  %v903_v14 = vld [vmem:[%s1288_s5 + $0x28] sm:$0xff]  }
  0xd6   : > { %821 = vmatpush3.bf16.msra.mxu1 %v902_v13 }
  0xd7   : > { %822 = vmatprep.subr.bf16.mxu1 %v1008_v16 }
  0xda   : > { %823 = vmatpush3.bf16.msra.mxu1 %v903_v14 }
  0xdb   : > { %824 = vmatprep.subr.bf16.mxu1 %v1008_v16 }
  0xde   : > { %825 = vmatpush3.bf16.msra.mxu1 %v904_v20 }
  0xdf   : > { %826 = vmatprep.subr.bf16.mxu1 %v1008_v16  ;;  %v762_v16 = vld [vmem:[%s1289_s6] ss:$0 sm:$0xff] }
 0x15d   : > { %v311_v21 = vpop.xlane.xlu1 %310 }
 0x15e   : > { %v315_v22 = vmul.f32 0.03125, %v311_v21  ;;  %v905_v21 = vld [vmem:[%s1288_s5 + $0x38] sm:$0xff]  }
 0x15f   : > { %827 = vmatpush3.bf16.msra.mxu1 %v905_v21 }
 0x160   : > { %v317_v23 = vadd.f32 1e-05, %v315_v22  ;;  %v754_v22 = vld [vmem:[#allocation3] ss:$0 sm:$0xff] }
 0x161   : > { %v314_v24 = vpop.xlane.xlu1 %313 }
 0x162   : > { %906 = vrsqrt.f32 %v317_v23  ;;  %v316_v25 = vmul.f32 0.03125, %v314_v24 }
 0x164   : > { %v318_v26 = vadd.f32 1e-05, %v316_v25 }
 0x166   : > { %908 = vrsqrt.f32 %v318_v26 }
 0x16c   : > { %v907_v27 = vpop.eup %906 }
 0x16d   : > { %v321_v29 = vmul.f32 %v907_v27, %v305_v7 }
 0x16f   : > { %v329_v31 = vmul.f32 %v747_v28, %v321_v29 }
 0x170   : > { %v909_v32 = vpop.eup %908 }
 0x171   : > { %v337_v33 = vadd.f32 %v748_v30, %v329_v31  ;;  %v322_v34 = vmul.f32 %v909_v32, %v306_v11 }
 0x173   : > { %v777_v35 = vpack.c.bf16 %v337_v33, %v337_v33  ;;  %v330_v36 = vmul.f32 %v747_v28, %v322_v34 }
 0x175   : > { %v354_v37 = vshrl.u32 %v777_v35, 16  ;;  %v338_v38 = vadd.f32 %v748_v30, %v330_v36  ;;  %v357_v40 = vshll.u32 %v777_v35, 16 }
 0x177   : > { %v356_v39 = vrot.slane %v354_v37, 7  ;;  %v778_v41 = vpack.c.bf16 %v338_v38, %v338_v38 }
 0x179   : > { %v359_v43 = vor.u32 %v357_v40, %v356_v39  ;;  %v362_v44 = vshrl.u32 %v778_v41, 16  ;;  %v365_v47 = vshll.u32 %v778_v41, 16  ;;  %v360_v49 = vrot.slane %v356_v39, 4 }
 0x17b   : > { %v377_v45 = vsel %vm375_vm4, %v359_v43, %v376_v42  ;;  %v364_v46 = vrot.slane %v362_v44, 7 }
 0x17c   : > { %378 = vst [vmem:[#allocation2] sm:$0xf] %v377_v45 }
 0x17d   : > { %v367_v50 = vor.u32 %v365_v47, %v364_v46  ;;  %v369_v51 = vrot.slane %v364_v46, 4 }
 0x17f   : > { %v368_v52 = vsel %vm352_vm7, %v360_v49, %v367_v50  ;;  %v383_v53 = vsel %vm381_vm8, %v369_v51, %v382_v48 }
 0x180   : > { %379 = vst.msk [vmem:[#allocation2 + $0x4] sm:$0xf] %vm339_vm1, %v368_v52  ;;  %384 = vst [vmem:[#allocation2 + $0x8] sm:$0x1] %v383_v53 }
 0x183   : > { %v385_v55 = vld [vmem:[#allocation2] sm:$0xf] }
 0x184   : > { %v388_v58 = vld [vmem:[#allocation2] sm:$0xe] }
 0x187   : > { %v386_v57 = vld [vmem:[#allocation2 + $0x4] sm:$0xf]  ;;  %v889_v59 = vld [vmem:[#allocation2 + $0x8] ss:$0 sps:$4 sm:$0x11]  }
 0x188   : > { %v753_v60 = vcombine.low %v388_v58, %v386_v57  ;;  %v751_v61 = vcombine.low %v385_v55, %v386_v57  ;;  %v417_v2 = vrot.slane %v889_v59, 1  ;;  %v406_v4 = vshll.u32 %v889_v59, 16 }
 0x18a   : > { %v416_v63 = vrot.slane %v753_v60, 1  ;;  %v401_v3 = vshll.u32 %v751_v61, 16  ;;  %v399_v6 = vshrl.u32 %v751_v61, 16  ;;  %v408_v10 = vrot.slane %v406_v4, 1 }
 0x18c   : > { %v418_v5 = vsel %vm415_vm10, %v416_v63, %v417_v2  ;;  %v403_v7 = vrot.slane %v401_v3, 1 }
 0x18d   : > { %419 = vrot.lane.b32.xlu1 %v418_v5, %s1010_s14 }
 0x18e   : > { %v404_v9 = vor.u32 %v403_v7, %v399_v6 }
 0x190   : > { %v409_v11 = vsel %vm397_vm11, %v404_v9, %v408_v10 }
 0x191   : > { %410 = vrot.lane.b32.xlu0 %v409_v11, %s1011_s19  ;;  %s284_s19 = scalar_lea.vmem [#allocation6], %s744_s9 }
 0x192   : > { %s664_s16 = sshll.u32 %s284_s19, 4  ;;  %s1237_s16 = int_to_ptr.vmem [resolvable:$true] %s664_s16 }
 0x193   : > { %s938_s21 = scalar_lea.vmem %s1237_s16, 256  ;;  %p945_p2 = scmp.lt.s32.totalorder %s1237_s16, %s943_s23 }
 0x194   : > { %p939_p5 = scmp.ne.s32.totalorder %s1237_s16, %s938_s21  ;;  %p946_p3 = scmp.lt.s32.totalorder %s944_s29, %s938_s21 }
 0x196   : > { %p940_p10 = pnand %p939_p5, %p1301_p9  ;;  %p947_p4 = por %p946_p3, %p945_p2 }
 0x198   : > { %p941_p12 = pneg %p940_p10 }
 0x19a   : > { %p948_p7 = pnand %p947_p4, %p941_p12 }
 0x1ff   : > { %v420_v17 = vpop.permute.xlu1 %419 }
 0x203   : > { %v411_v15 = vpop.permute.xlu0 %410 }
 0x204   : > { %v422_v18 = vsel %vm295_vm0, %v751_v61, %v411_v15 }
 0x205   : > { %v425_v19 = vsel %vm423_vm12, %v422_v18, %v420_v17 }
 0x206   : > { %809 = vmatmul.mubr.msk.bf16.vlgmr.msra.gmra.mrb[0].mxu0 %vm481_vm13, %v425_v19 }
 0x2d9   : > { %v518_v23 = vpop.f32.mrb[0].mxu0 }
 0x2da   : > { %v519_v24 = vadd.f32 %v754_v22, %v518_v23  ;;  %v810_v25 = vpop.f32.mrb[1].mxu0 }
 0x2db   : > { %v521_v26 = vpop.f32.mrb[2].mxu0 }
 0x2dc   : > { %v527_v27 = vmul.f32 0.3, %v519_v24  ;;  %v522_v28 = vadd.f32 %v754_v22, %v521_v26  ;;  %v811_v29 = vpop.f32.mrb[3].mxu0  ;;  %vm525_vm14 = vcmp.ge.f32.partialorder %v519_v24, 0.0 }
 0x2de   : > { %vm526_vm15 = vcmp.ge.f32.partialorder %v522_v28, 0.0  ;;  %v528_v30 = vmul.f32 0.3, %v522_v28  ;;  %v529_v31 = vsel %vm525_vm14, %v519_v24, %v527_v27 }
 0x2e0   : > { %v530_v32 = vsel %vm526_vm15, %v522_v28, %v528_v30 }
 0x2e1   : > { %v531_v33 = vpack.c.bf16 %v530_v32, %v529_v31 }
 0x2e3   : > { %829 = vmatmul.mubr.bf16.vlgmr.msra.gmra.mrb[0].mxu1 %v531_v33 }
 0x3b6   : > { %v637_v34 = vpop.f32.mrb[0].mxu1 }
 0x3b7   : > { %v638_v35 = vadd.f32 %v762_v16, %v637_v34  ;;  %v830_v36 = vpop.f32.mrb[1].mxu1 }
 0x3b8   : > { %v640_v37 = vpop.f32.mrb[2].mxu1 }
 0x3b9   : > { %v644_v38 = vmul.f32 0.5, %v638_v35  ;;  %v641_v39 = vadd.f32 %v762_v16, %v640_v37  ;;  %v831_v40 = vpop.f32.mrb[3].mxu1 }
 0x3bb   : > { %v646_v41 = vadd.f32 %v644_v38, %v1143_v0  ;;  %v645_v42 = vmul.f32 0.5, %v641_v39 }
 0x3bd   : > { %648 = vst.msk [vmem:[%s284_s19] sm:$0xff] %vm295_vm0, %v646_v41  ;;  %v647_v43 = vadd.f32 %v645_v42, %v1145_v1 }
 0x3bf   : > { %649 = vst.msk [vmem:[%s284_s19 + $0x8] sm:$0xff] %vm295_vm0, %v647_v43 }
 0x3c0   : > { %951 = shalt.err (!%p948_p7)
}
 0x3c1   : > { %s952_s8 = scalar_lea.hbm %s1235_s15, 256  ;;  %s956_s17 = scalar_lea.hbm %s1290_s7, 512 }
 0x3c2   : > { %p953_p8 = scmp.ne.s32.totalorder %s1235_s15, %s952_s8  ;;  %p957_p1 = scmp.lt.u32.totalorder %s1235_s15, %s1290_s7 }
 0x3c3   : > { %p958_p0 = scmp.lt.u32.totalorder %s956_s17, %s952_s8  ;;  %p960_p5 = scmp.lt.u32.totalorder %s952_s8, %s1235_s15 }
 0x3c4   : > { %p954_p11 = pnand %p953_p8, %p1301_p9 }
 0x3c5   : > { %p959_p6 = por %p958_p0, %p957_p1 }
 0x3c6   : > { %p955_p13 = pneg %p954_p11 }
 0x3c7   : > { %p961_p10 = por %p960_p5, %p959_p6 }
 0x3c9   : > { %p962_p12 = pnand %p961_p10, %p955_p13 }
 0x3cb   : > { %965 = shalt.err (!%p962_p12)
}
 0x3cc   : > { %s1013_s20 = smov 128   ;;  %s1014_s13 = smov 8  }
 0x3cd   : > { %836 = dma.vmem_to_hbm [thread:$0]  (%p1301_p9), %s1237_s16, 256, %s1235_s15, %s1242_s28, %s1013_s20, %s1013_s20, %s1014_s13  }
 0x3ce PF: > { %p848_p2 = scmp.ge.s32.totalorder %s1004_s27, 2  ;;  %s679_s21 = sand.u32 1, %s992_s24  }
 0x3cf   : > { %p1302_p3 = scmp.ne.s32.totalorder %s1295_s12, 0  ;;  %s680_s22 = scalar_lea.sflag [#allocation5], %s679_s21 }
 0x3d1   : > { %p843_p4 = pnand %p848_p2, %p1302_p3 }
 0x3d3   : > { %987 = dma.done.wait (!%p843_p4), %s680_s22, 256  }
 0x3d4   : > { %989 = vsyncadd (!%p843_p4), %s680_s22, 4294967040  ;;  %p18_p7 = scmp.ge.s32.totalorder %s1080_s30, 4   ;;  %s1303_s24 = smov %s996_s25 }
 0x3d5   : > { %s1304_s25 = smov %s1000_s26  ;;  %s1305_s26 = smov %s1091_s10 }
 0x3d6   : > { %s1306_s27 = smov %s1080_s30  ;;  %20 = sbr.rel (!%p18_p7) target bundleno = 4 (0x4), region = 88 }
 0x3dd   :  { %685 = vsyncpa [#allocation4], 1 }
 0x3de   :  { %687 = vsyncpa [#allocation4 + $0x1], 1 }
 0x3df   :  { %688 = vsyncpa [#allocation5], 1 }
 0x3e0   :  { %690 = vsyncpa [#allocation5 + $0x1], 1 }

</bundles_post_ra>
